<compile_context>
chip_gen: v7x
topology: tpu7x:2x2x1
jax: 0.10.0
libtpu: 0.0.40
codegen_flags: <defaults>
</compile_context>

<pallas_src>
import functools

import jax
import jax.numpy as jnp
from jax.experimental import pallas as pl
from jax.experimental.pallas import tpu as pltpu

BN_EPS = 1e-5
HALO = 128                                 # lane-aligned right halo; covers K-1 <= 128
L_TILE_TARGET = 8192                       # lanes per grid step (tiled path)
STEP_INPUT_BYTES_TARGET = 512 * 1024       # fold batch rows until a step moves ~0.5 MiB
FUSED_VMEM_BYTES_LIMIT = 8 * 1024 * 1024   # single-pass path if working set fits VMEM


def _round_up(a, b):
    return (a + b - 1) // b * b


def _conv_from_ext(x_ext, w2d, k_taps, l_tile):
    """K-tap Conv1d on the VPU as broadcast FMAs (no im2col slab, no MXU).

    x_ext: (bn, c_in, >= l_tile + k_taps - 1) float32
    w2d:   (c_out, c_in * k_taps) float32 with w2d[co, ci*k_taps + kk] = w[co, ci, kk]
    returns (bn, c_out, l_tile) float32
    """
    bn, c_in, _ = x_ext.shape
    c_out = w2d.shape[0]
    acc = jnp.zeros((bn, c_out, l_tile), jnp.float32)
    # TODO(synk): for large c_in*k_taps (>~64) an MXU matmul becomes preferable;
    # this unrolled VPU path targets BasicBlock's small channel counts.
    for kk in range(k_taps):
        xs = x_ext[:, :, kk:kk + l_tile]           # one lane-shifted view per tap
        for ci in range(c_in):
            col = ci * k_taps + kk
            acc = acc + w2d[:, col:col + 1][None] * xs[:, ci:ci + 1, :]
    return acc


# ---------------------------------------------------------------------------
# Fused single-pass kernel (whole problem resident in VMEM, x read once).
# ---------------------------------------------------------------------------
def fused_kernel(x_ref, w_ref, gamma_ref, beta_ref, o_ref, *, k_taps, l_out):
    n, c_out, l_pad = o_ref.shape
    x = x_ref[...].astype(jnp.float32)                       # (n, c_in, l_pad + HALO)
    acc = _conv_from_ext(x, w_ref[...], k_taps, l_pad)       # (n, c_out, l_pad)

    lane = jax.lax.broadcasted_iota(jnp.int32, acc.shape, 2)
    masked = jnp.where(lane < l_out, acc, 0.0)
    cnt = jnp.float32(n * l_out)
    s = jnp.sum(jnp.sum(masked, axis=2, keepdims=True), axis=0, keepdims=True)
    ss = jnp.sum(jnp.sum(masked * masked, axis=2, keepdims=True), axis=0,
                 keepdims=True)
    mean = s / cnt
    # TODO(synk): E[x^2]-mean^2 can lose precision for huge-magnitude activations.
    var = jnp.maximum(ss / cnt - mean * mean, 0.0)
    inv_std = jax.lax.rsqrt(var + BN_EPS)
    scale = gamma_ref[...][None] * inv_std                   # (1, c_out, 1)
    shift = beta_ref[...][None] - mean * scale
    o_ref[...] = jnp.maximum(acc * scale + shift, 0.0).astype(o_ref.dtype)


# ---------------------------------------------------------------------------
# Tiled two-phase kernels (grid = (batch blocks, L tiles)).
# ---------------------------------------------------------------------------
def conv_stats_kernel(x_ref, xh_ref, w_ref, stats_ref, *, k_taps, l_tile, l_out):
    """Phase 1: conv tile -> per-channel sum / sum-of-squares (masked to valid L)."""
    j = pl.program_id(1)
    x_ext = jnp.concatenate(
        [x_ref[...].astype(jnp.float32), xh_ref[...].astype(jnp.float32)], axis=-1)
    acc = _conv_from_ext(x_ext, w_ref[...], k_taps, l_tile)   # (bn, c_out, l_tile)
    lane = jax.lax.broadcasted_iota(jnp.int32, acc.shape, 2)
    acc = jnp.where(j * l_tile + lane < l_out, acc, 0.0)      # mask padded tail
    s = jnp.sum(jnp.sum(acc, axis=2, keepdims=True), axis=0)          # (c_out, 1)
    ss = jnp.sum(jnp.sum(acc * acc, axis=2, keepdims=True), axis=0)   # (c_out, 1)
    st = jnp.concatenate([s, ss], axis=1)[None]                        # (1, c_out, 2)

    @pl.when(j == 0)
    def _():
        stats_ref[...] = jnp.zeros_like(stats_ref)

    stats_ref[...] += st


def conv_bn_relu_kernel(x_ref, xh_ref, w_ref, scale_ref, shift_ref, o_ref, *,
                        k_taps, l_tile):
    """Phase 2: recompute conv tile, apply folded BN FMA + ReLU."""
    x_ext = jnp.concatenate(
        [x_ref[...].astype(jnp.float32), xh_ref[...].astype(jnp.float32)], axis=-1)
    acc = _conv_from_ext(x_ext, w_ref[...], k_taps, l_tile)
    y = jnp.maximum(acc * scale_ref[...][None] + shift_ref[...][None], 0.0)
    o_ref[...] = y.astype(o_ref.dtype)


# ---------------------------------------------------------------------------
# Wrapper.
# ---------------------------------------------------------------------------
@functools.partial(jax.jit, static_argnames=("padding",))
def basic_block(x, w, b, gamma, beta, *, padding):
    """x: (N, C_in, L) f32; w: (C_out, C_in, K); returns (N, C_out, L_out)."""
    del b  # Conv bias cancels exactly under train-mode BatchNorm (mean subtraction).
    n, c_in, l = x.shape
    c_out, _, k = w.shape
    l_out = l + 2 * padding - k + 1
    assert k - 1 <= HALO, "kernel_size - 1 must fit in the 128-wide halo"
    assert l_out >= 1

    w2d = w.reshape(c_out, c_in * k).astype(jnp.float32)      # [co, ci*k + kk]
    gamma2 = gamma.astype(jnp.float32).reshape(c_out, 1)
    beta2 = beta.astype(jnp.float32).reshape(c_out, 1)

    l_out_pad128 = _round_up(l_out, 128)

    # ---- fused single-pass path (working set resident in VMEM) ----
    fused_l_in = l_out_pad128 + HALO
    fused_bytes = 4 * n * (2 * c_in * fused_l_in + 5 * c_out * l_out_pad128)
    if fused_bytes <= FUSED_VMEM_BYTES_LIMIT:
        x_pad = jnp.pad(x, ((0, 0), (0, 0), (padding, fused_l_in - l - padding)))
        out_pad = pl.pallas_call(
            functools.partial(fused_kernel, k_taps=k, l_out=l_out),
            out_shape=jax.ShapeDtypeStruct((n, c_out, l_out_pad128), x.dtype),
            grid=(1,),
            in_specs=[
                pl.BlockSpec((n, c_in, fused_l_in), lambda i: (0, 0, 0)),
                pl.BlockSpec((c_out, c_in * k), lambda i: (0, 0)),
                pl.BlockSpec((c_out, 1), lambda i: (0, 0)),
                pl.BlockSpec((c_out, 1), lambda i: (0, 0)),
            ],
            out_specs=pl.BlockSpec((n, c_out, l_out_pad128), lambda i: (0, 0, 0)),
            compiler_params=pltpu.CompilerParams(
                dimension_semantics=("arbitrary",)),
        )(x_pad, w2d, gamma2, beta2)
        return out_pad[:, :, :l_out]

    # ---- tiled two-phase path ----
    l_tile = min(L_TILE_TARGET, l_out_pad128)
    num_l = pl.cdiv(l_out_pad128, l_tile)
    l_out_pad = num_l * l_tile
    l_in_pad = l_out_pad + HALO

    # Fold batch rows until a grid step moves ~STEP_INPUT_BYTES_TARGET of input.
    bn = max(1, min(n, STEP_INPUT_BYTES_TARGET // (c_in * l_tile * 4)))
    num_n = pl.cdiv(n, bn)
    n_pad = num_n * bn

    # Zero-pad N and L.  Padded rows/columns contribute exactly 0 to the BN sums
    # (bias is dropped), so only a lane mask against l_out is needed in phase 1.
    x_pad = jnp.pad(x, ((0, n_pad - n), (0, 0),
                        (padding, l_in_pad - l - padding)))

    grid = (num_n, num_l)
    x_main_spec = pl.BlockSpec((bn, c_in, l_tile), lambda i, j: (i, 0, j))
    x_halo_spec = pl.BlockSpec((bn, c_in, HALO),
                               lambda i, j: (i, 0, (j + 1) * (l_tile // HALO)))
    w_spec = pl.BlockSpec((c_out, c_in * k), lambda i, j: (0, 0))

    # ---- phase 1: conv + per-(n-block, channel) sum / sum-of-squares ----
    stats = pl.pallas_call(
        functools.partial(conv_stats_kernel, k_taps=k, l_tile=l_tile, l_out=l_out),
        out_shape=jax.ShapeDtypeStruct((num_n, c_out, 2), jnp.float32),
        grid=grid,
        in_specs=[x_main_spec, x_halo_spec, w_spec],
        out_specs=pl.BlockSpec((1, c_out, 2), lambda i, j: (i, 0, 0)),
        compiler_params=pltpu.CompilerParams(
            dimension_semantics=("parallel", "arbitrary"),
            vmem_limit_bytes=32 * 1024 * 1024),
    )(x_pad, x_pad, w2d)

    # ---- fold BN (train mode, biased variance) into one per-channel FMA ----
    tot = jnp.sum(stats, axis=0)                         # (c_out, 2) global sums
    cnt = jnp.float32(n * l_out)
    mean = tot[:, 0] / cnt
    # TODO(synk): E[x^2]-mean^2 can lose precision for huge-magnitude activations.
    var = jnp.maximum(tot[:, 1] / cnt - mean * mean, 0.0)
    inv_std = jax.lax.rsqrt(var + BN_EPS)
    scale = gamma.astype(jnp.float32) * inv_std          # (C_out,)
    shift = beta.astype(jnp.float32) - mean * scale      # (C_out,)

    # ---- phase 2: recompute conv tile, apply scale/shift + ReLU ----
    out_pad = pl.pallas_call(
        functools.partial(conv_bn_relu_kernel, k_taps=k, l_tile=l_tile),
        out_shape=jax.ShapeDtypeStruct((n_pad, c_out, l_out_pad), x.dtype),
        grid=grid,
        in_specs=[x_main_spec, x_halo_spec, w_spec,
                  pl.BlockSpec((c_out, 1), lambda i, j: (0, 0)),
                  pl.BlockSpec((c_out, 1), lambda i, j: (0, 0))],
        out_specs=pl.BlockSpec((bn, c_out, l_tile), lambda i, j: (i, 0, j)),
        compiler_params=pltpu.CompilerParams(
            dimension_semantics=("parallel", "parallel"),
            vmem_limit_bytes=32 * 1024 * 1024),
    )(x_pad, x_pad, w2d, scale.reshape(c_out, 1), shift.reshape(c_out, 1))

    return out_pad[:n, :, :l_out]


def reference_basic_block(x, w, b, gamma, beta, *, padding):
    """Pure-JAX reference mirroring PyTorch Conv1d + train-mode BatchNorm1d + ReLU."""
    out = jax.lax.conv_general_dilated(
        x, w, window_strides=(1,), padding=[(padding, padding)],
        dimension_numbers=("NCH", "OIH", "NCH"))
    out = out + b[None, :, None]
    mean = jnp.mean(out, axis=(0, 2), keepdims=True)
    var = jnp.mean((out - mean) ** 2, axis=(0, 2), keepdims=True)
    out = (out - mean) * jax.lax.rsqrt(var + BN_EPS)
    out = out * gamma[None, :, None] + beta[None, :, None]
    return jnp.maximum(out, 0.0)


if __name__ == "__main__":
    def _run_case(n, c_in, c_out, l, k, pad):
        key = jax.random.PRNGKey(0)
        kx, kw, kb, kg, kbe = jax.random.split(key, 5)
        x = jax.random.normal(kx, (n, c_in, l), dtype=jnp.float32)
        bound = 1.0 / (c_in * k) ** 0.5
        w = jax.random.uniform(kw, (c_out, c_in, k), jnp.float32, -bound, bound)
        b = jax.random.uniform(kb, (c_out,), jnp.float32, -bound, bound)
        gamma = 1.0 + 0.1 * jax.random.normal(kg, (c_out,), jnp.float32)
        beta = 0.1 * jax.random.normal(kbe, (c_out,), jnp.float32)

        out = jax.block_until_ready(basic_block(x, w, b, gamma, beta, padding=pad))
        ref = reference_basic_block(x, w, b, gamma, beta, padding=pad)
        l_out = l + 2 * pad - k + 1
        assert out.shape == (n, c_out, l_out), out.shape
        err = float(jnp.max(jnp.abs(out - ref)))
        assert jnp.allclose(out, ref, atol=1e-4, rtol=1e-4), err

    # Small shapes per BasicBlock(in_channels=4, out_channels=8, kernel_size=3,
    # padding=1) on x of shape (N=2, C_in=4, L=16): fused single-pass path.
    _run_case(2, 4, 8, 16, 3, 1)
    # Larger L exercising the tiled two-phase path (grid over batch x L tiles).
    _run_case(2, 4, 8, 70000, 3, 1)

    print("KERNEL_OK")
</pallas_src>

<mosaic_0001>
module attributes {stable_mosaic.version = 11 : i64} {
  func.func @fused_kernel(%arg0: i32, %arg1: memref<2x4x256xf32, #tpu.memory_space<vmem>>, %arg2: memref<8x12xf32, #tpu.memory_space<vmem>>, %arg3: memref<8x1xf32, #tpu.memory_space<vmem>>, %arg4: memref<8x1xf32, #tpu.memory_space<vmem>>, %arg5: memref<2x8x128xf32, #tpu.memory_space<vmem>>) attributes {dimension_semantics = [#tpu.dimension_semantics<arbitrary>], iteration_bounds = array<i64: 1>, scalar_prefetch = 0 : i64, scratch_operands = 0 : i64, tpu.core_type = #tpu.core_type<tc>, window_params = [{pipeline_mode = #tpu.pipeline_mode<synchronous>, transform_indices = @transform_0, window_bounds = array<i64: 2, 4, 256>}, {pipeline_mode = #tpu.pipeline_mode<synchronous>, transform_indices = @transform_1, window_bounds = array<i64: 8, 12>}, {pipeline_mode = #tpu.pipeline_mode<synchronous>, transform_indices = @transform_2, window_bounds = array<i64: 8, 1>}, {pipeline_mode = #tpu.pipeline_mode<synchronous>, transform_indices = @transform_3, window_bounds = array<i64: 8, 1>}, {pipeline_mode = #tpu.pipeline_mode<synchronous>, transform_indices = @transform_4, window_bounds = array<i64: 2, 8, 128>}]} {
    %c0 = arith.constant 0 : index
    %c0_0 = arith.constant 0 : index
    %c0_1 = arith.constant 0 : index
    %0 = vector.load %arg1[%c0, %c0_0, %c0_1] : memref<2x4x256xf32, #tpu.memory_space<vmem>>, vector<2x4x256xf32>
    %c0_2 = arith.constant 0 : index
    %c0_3 = arith.constant 0 : index
    %1 = vector.load %arg2[%c0_2, %c0_3] : memref<8x12xf32, #tpu.memory_space<vmem>>, vector<8x12xf32>
    %cst = arith.constant 0.000000e+00 : f32
    %2 = vector.broadcast %cst : f32 to vector<2x8x128xf32>
    %3 = vector.extract_strided_slice %0 {offsets = [0, 0, 0], sizes = [2, 4, 128], strides = [1, 1, 1]} : vector<2x4x256xf32> to vector<2x4x128xf32>
    %4 = vector.extract_strided_slice %1 {offsets = [0, 0], sizes = [8, 1], strides = [1, 1]} : vector<8x12xf32> to vector<8x1xf32>
    %5 = vector.shape_cast %4 : vector<8x1xf32> to vector<1x8x1xf32>
    %6 = vector.extract_strided_slice %3 {offsets = [0, 0, 0], sizes = [2, 1, 128], strides = [1, 1, 1]} : vector<2x4x128xf32> to vector<2x1x128xf32>
    %7 = vector.broadcast %5 : vector<1x8x1xf32> to vector<2x8x128xf32>
    %8 = vector.broadcast %6 : vector<2x1x128xf32> to vector<2x8x128xf32>
    %9 = arith.mulf %7, %8 : vector<2x8x128xf32>
    %10 = arith.addf %2, %9 : vector<2x8x128xf32>
    %11 = vector.extract_strided_slice %1 {offsets = [0, 3], sizes = [8, 1], strides = [1, 1]} : vector<8x12xf32> to vector<8x1xf32>
    %12 = vector.shape_cast %11 : vector<8x1xf32> to vector<1x8x1xf32>
    %13 = vector.extract_strided_slice %3 {offsets = [0, 1, 0], sizes = [2, 1, 128], strides = [1, 1, 1]} : vector<2x4x128xf32> to vector<2x1x128xf32>
    %14 = vector.broadcast %12 : vector<1x8x1xf32> to vector<2x8x128xf32>
    %15 = vector.broadcast %13 : vector<2x1x128xf32> to vector<2x8x128xf32>
    %16 = arith.mulf %14, %15 : vector<2x8x128xf32>
    %17 = arith.addf %10, %16 : vector<2x8x128xf32>
    %18 = vector.extract_strided_slice %1 {offsets = [0, 6], sizes = [8, 1], strides = [1, 1]} : vector<8x12xf32> to vector<8x1xf32>
    %19 = vector.shape_cast %18 : vector<8x1xf32> to vector<1x8x1xf32>
    %20 = vector.extract_strided_slice %3 {offsets = [0, 2, 0], sizes = [2, 1, 128], strides = [1, 1, 1]} : vector<2x4x128xf32> to vector<2x1x128xf32>
    %21 = vector.broadcast %19 : vector<1x8x1xf32> to vector<2x8x128xf32>
    %22 = vector.broadcast %20 : vector<2x1x128xf32> to vector<2x8x128xf32>
    %23 = arith.mulf %21, %22 : vector<2x8x128xf32>
    %24 = arith.addf %17, %23 : vector<2x8x128xf32>
    %25 = vector.extract_strided_slice %1 {offsets = [0, 9], sizes = [8, 1], strides = [1, 1]} : vector<8x12xf32> to vector<8x1xf32>
    %26 = vector.shape_cast %25 : vector<8x1xf32> to vector<1x8x1xf32>
    %27 = vector.extract_strided_slice %3 {offsets = [0, 3, 0], sizes = [2, 1, 128], strides = [1, 1, 1]} : vector<2x4x128xf32> to vector<2x1x128xf32>
    %28 = vector.broadcast %26 : vector<1x8x1xf32> to vector<2x8x128xf32>
    %29 = vector.broadcast %27 : vector<2x1x128xf32> to vector<2x8x128xf32>
    %30 = arith.mulf %28, %29 : vector<2x8x128xf32>
    %31 = arith.addf %24, %30 : vector<2x8x128xf32>
    %32 = vector.extract_strided_slice %0 {offsets = [0, 0, 1], sizes = [2, 4, 128], strides = [1, 1, 1]} : vector<2x4x256xf32> to vector<2x4x128xf32>
    %33 = vector.extract_strided_slice %1 {offsets = [0, 1], sizes = [8, 1], strides = [1, 1]} : vector<8x12xf32> to vector<8x1xf32>
    %34 = vector.shape_cast %33 : vector<8x1xf32> to vector<1x8x1xf32>
    %35 = vector.extract_strided_slice %32 {offsets = [0, 0, 0], sizes = [2, 1, 128], strides = [1, 1, 1]} : vector<2x4x128xf32> to vector<2x1x128xf32>
    %36 = vector.broadcast %34 : vector<1x8x1xf32> to vector<2x8x128xf32>
    %37 = vector.broadcast %35 : vector<2x1x128xf32> to vector<2x8x128xf32>
    %38 = arith.mulf %36, %37 : vector<2x8x128xf32>
    %39 = arith.addf %31, %38 : vector<2x8x128xf32>
    %40 = vector.extract_strided_slice %1 {offsets = [0, 4], sizes = [8, 1], strides = [1, 1]} : vector<8x12xf32> to vector<8x1xf32>
    %41 = vector.shape_cast %40 : vector<8x1xf32> to vector<1x8x1xf32>
    %42 = vector.extract_strided_slice %32 {offsets = [0, 1, 0], sizes = [2, 1, 128], strides = [1, 1, 1]} : vector<2x4x128xf32> to vector<2x1x128xf32>
    %43 = vector.broadcast %41 : vector<1x8x1xf32> to vector<2x8x128xf32>
    %44 = vector.broadcast %42 : vector<2x1x128xf32> to vector<2x8x128xf32>
    %45 = arith.mulf %43, %44 : vector<2x8x128xf32>
    %46 = arith.addf %39, %45 : vector<2x8x128xf32>
    %47 = vector.extract_strided_slice %1 {offsets = [0, 7], sizes = [8, 1], strides = [1, 1]} : vector<8x12xf32> to vector<8x1xf32>
    %48 = vector.shape_cast %47 : vector<8x1xf32> to vector<1x8x1xf32>
    %49 = vector.extract_strided_slice %32 {offsets = [0, 2, 0], sizes = [2, 1, 128], strides = [1, 1, 1]} : vector<2x4x128xf32> to vector<2x1x128xf32>
    %50 = vector.broadcast %48 : vector<1x8x1xf32> to vector<2x8x128xf32>
    %51 = vector.broadcast %49 : vector<2x1x128xf32> to vector<2x8x128xf32>
    %52 = arith.mulf %50, %51 : vector<2x8x128xf32>
    %53 = arith.addf %46, %52 : vector<2x8x128xf32>
    %54 = vector.extract_strided_slice %1 {offsets = [0, 10], sizes = [8, 1], strides = [1, 1]} : vector<8x12xf32> to vector<8x1xf32>
    %55 = vector.shape_cast %54 : vector<8x1xf32> to vector<1x8x1xf32>
    %56 = vector.extract_strided_slice %32 {offsets = [0, 3, 0], sizes = [2, 1, 128], strides = [1, 1, 1]} : vector<2x4x128xf32> to vector<2x1x128xf32>
    %57 = vector.broadcast %55 : vector<1x8x1xf32> to vector<2x8x128xf32>
    %58 = vector.broadcast %56 : vector<2x1x128xf32> to vector<2x8x128xf32>
    %59 = arith.mulf %57, %58 : vector<2x8x128xf32>
    %60 = arith.addf %53, %59 : vector<2x8x128xf32>
    %61 = vector.extract_strided_slice %0 {offsets = [0, 0, 2], sizes = [2, 4, 128], strides = [1, 1, 1]} : vector<2x4x256xf32> to vector<2x4x128xf32>
    %62 = vector.extract_strided_slice %1 {offsets = [0, 2], sizes = [8, 1], strides = [1, 1]} : vector<8x12xf32> to vector<8x1xf32>
    %63 = vector.shape_cast %62 : vector<8x1xf32> to vector<1x8x1xf32>
    %64 = vector.extract_strided_slice %61 {offsets = [0, 0, 0], sizes = [2, 1, 128], strides = [1, 1, 1]} : vector<2x4x128xf32> to vector<2x1x128xf32>
    %65 = vector.broadcast %63 : vector<1x8x1xf32> to vector<2x8x128xf32>
    %66 = vector.broadcast %64 : vector<2x1x128xf32> to vector<2x8x128xf32>
    %67 = arith.mulf %65, %66 : vector<2x8x128xf32>
    %68 = arith.addf %60, %67 : vector<2x8x128xf32>
    %69 = vector.extract_strided_slice %1 {offsets = [0, 5], sizes = [8, 1], strides = [1, 1]} : vector<8x12xf32> to vector<8x1xf32>
    %70 = vector.shape_cast %69 : vector<8x1xf32> to vector<1x8x1xf32>
    %71 = vector.extract_strided_slice %61 {offsets = [0, 1, 0], sizes = [2, 1, 128], strides = [1, 1, 1]} : vector<2x4x128xf32> to vector<2x1x128xf32>
    %72 = vector.broadcast %70 : vector<1x8x1xf32> to vector<2x8x128xf32>
    %73 = vector.broadcast %71 : vector<2x1x128xf32> to vector<2x8x128xf32>
    %74 = arith.mulf %72, %73 : vector<2x8x128xf32>
    %75 = arith.addf %68, %74 : vector<2x8x128xf32>
    %76 = vector.extract_strided_slice %1 {offsets = [0, 8], sizes = [8, 1], strides = [1, 1]} : vector<8x12xf32> to vector<8x1xf32>
    %77 = vector.shape_cast %76 : vector<8x1xf32> to vector<1x8x1xf32>
    %78 = vector.extract_strided_slice %61 {offsets = [0, 2, 0], sizes = [2, 1, 128], strides = [1, 1, 1]} : vector<2x4x128xf32> to vector<2x1x128xf32>
    %79 = vector.broadcast %77 : vector<1x8x1xf32> to vector<2x8x128xf32>
    %80 = vector.broadcast %78 : vector<2x1x128xf32> to vector<2x8x128xf32>
    %81 = arith.mulf %79, %80 : vector<2x8x128xf32>
    %82 = arith.addf %75, %81 : vector<2x8x128xf32>
    %83 = vector.extract_strided_slice %1 {offsets = [0, 11], sizes = [8, 1], strides = [1, 1]} : vector<8x12xf32> to vector<8x1xf32>
    %84 = vector.shape_cast %83 : vector<8x1xf32> to vector<1x8x1xf32>
    %85 = vector.extract_strided_slice %61 {offsets = [0, 3, 0], sizes = [2, 1, 128], strides = [1, 1, 1]} : vector<2x4x128xf32> to vector<2x1x128xf32>
    %86 = vector.broadcast %84 : vector<1x8x1xf32> to vector<2x8x128xf32>
    %87 = vector.broadcast %85 : vector<2x1x128xf32> to vector<2x8x128xf32>
    %88 = arith.mulf %86, %87 : vector<2x8x128xf32>
    %89 = arith.addf %82, %88 : vector<2x8x128xf32>
    %90 = tpu.iota {dimensions = array<i32: 2>} : vector<2x8x128xi32>
    %c16_i32 = arith.constant 16 : i32
    %91 = vector.broadcast %c16_i32 : i32 to vector<2x8x128xi32>
    %92 = arith.cmpi slt, %90, %91 : vector<2x8x128xi32>
    %cst_4 = arith.constant 0.000000e+00 : f32
    %93 = vector.broadcast %cst_4 : f32 to vector<2x8x128xf32>
    %94 = arith.select %92, %89, %93 : vector<2x8x128xi1>, vector<2x8x128xf32>
    %cst_5 = arith.constant dense<0.000000e+00> : vector<2x8xf32>
    %95 = vector.multi_reduction <add>, %94, %cst_5 [2] : vector<2x8x128xf32> to vector<2x8xf32>
    %96 = vector.shape_cast %95 : vector<2x8xf32> to vector<2x8x1xf32>
    %cst_6 = arith.constant dense<0.000000e+00> : vector<8x1xf32>
    %97 = vector.multi_reduction <add>, %96, %cst_6 [0] : vector<2x8x1xf32> to vector<8x1xf32>
    %98 = vector.shape_cast %97 : vector<8x1xf32> to vector<1x8x1xf32>
    %99 = arith.mulf %94, %94 : vector<2x8x128xf32>
    %cst_7 = arith.constant dense<0.000000e+00> : vector<2x8xf32>
    %100 = vector.multi_reduction <add>, %99, %cst_7 [2] : vector<2x8x128xf32> to vector<2x8xf32>
    %101 = vector.shape_cast %100 : vector<2x8xf32> to vector<2x8x1xf32>
    %cst_8 = arith.constant dense<0.000000e+00> : vector<8x1xf32>
    %102 = vector.multi_reduction <add>, %101, %cst_8 [0] : vector<2x8x1xf32> to vector<8x1xf32>
    %103 = vector.shape_cast %102 : vector<8x1xf32> to vector<1x8x1xf32>
    %cst_9 = arith.constant 3.200000e+01 : f32
    %104 = vector.broadcast %cst_9 : f32 to vector<1x8x1xf32>
    %105 = arith.divf %98, %104 : vector<1x8x1xf32>
    %cst_10 = arith.constant 3.200000e+01 : f32
    %106 = vector.broadcast %cst_10 : f32 to vector<1x8x1xf32>
    %107 = arith.divf %103, %106 : vector<1x8x1xf32>
    %108 = arith.mulf %105, %105 : vector<1x8x1xf32>
    %109 = arith.subf %107, %108 : vector<1x8x1xf32>
    %cst_11 = arith.constant 0.000000e+00 : f32
    %110 = vector.broadcast %cst_11 : f32 to vector<1x8x1xf32>
    %111 = arith.maximumf %109, %110 : vector<1x8x1xf32>
    %cst_12 = arith.constant 9.99999974E-6 : f32
    %112 = vector.broadcast %cst_12 : f32 to vector<1x8x1xf32>
    %113 = arith.addf %111, %112 : vector<1x8x1xf32>
    %114 = math.rsqrt %113 : vector<1x8x1xf32>
    %c0_13 = arith.constant 0 : index
    %c0_14 = arith.constant 0 : index
    %115 = vector.load %arg3[%c0_13, %c0_14] : memref<8x1xf32, #tpu.memory_space<vmem>>, vector<8x1xf32>
    %116 = vector.shape_cast %115 : vector<8x1xf32> to vector<1x8x1xf32>
    %117 = arith.mulf %116, %114 : vector<1x8x1xf32>
    %c0_15 = arith.constant 0 : index
    %c0_16 = arith.constant 0 : index
    %118 = vector.load %arg4[%c0_15, %c0_16] : memref<8x1xf32, #tpu.memory_space<vmem>>, vector<8x1xf32>
    %119 = vector.shape_cast %118 : vector<8x1xf32> to vector<1x8x1xf32>
    %120 = arith.mulf %105, %117 : vector<1x8x1xf32>
    %121 = arith.subf %119, %120 : vector<1x8x1xf32>
    %122 = vector.broadcast %117 : vector<1x8x1xf32> to vector<2x8x128xf32>
    %123 = arith.mulf %89, %122 : vector<2x8x128xf32>
    %124 = vector.broadcast %121 : vector<1x8x1xf32> to vector<2x8x128xf32>
    %125 = arith.addf %123, %124 : vector<2x8x128xf32>
    %cst_17 = arith.constant 0.000000e+00 : f32
    %126 = vector.broadcast %cst_17 : f32 to vector<2x8x128xf32>
    %127 = arith.maximumf %125, %126 : vector<2x8x128xf32>
    %c0_18 = arith.constant 0 : index
    %c0_19 = arith.constant 0 : index
    %c0_20 = arith.constant 0 : index
    %128 = vector.load %arg5[%c0_18, %c0_19, %c0_20] : memref<2x8x128xf32, #tpu.memory_space<vmem>>, vector<2x8x128xf32>
    tpu.vector_store %arg5[%c0_18, %c0_19, %c0_20], %127 {strides = array<i32>} : memref<2x8x128xf32, #tpu.memory_space<vmem>>, vector<2x8x128xf32>,
    return
  }
  func.func @transform_0(%arg0: i32) -> (i32, i32, i32) {
    %c0_i32 = arith.constant 0 : i32
    %c0_i32_0 = arith.constant 0 : i32
    %c0_i32_1 = arith.constant 0 : i32
    %c0_i32_2 = arith.constant 0 : i32
    return %c0_i32, %c0_i32_0, %c0_i32_1 : i32, i32, i32
  }
  func.func @transform_1(%arg0: i32) -> (i32, i32) {
    %c0_i32 = arith.constant 0 : i32
    %c0_i32_0 = arith.constant 0 : i32
    %c0_i32_1 = arith.constant 0 : i32
    return %c0_i32, %c0_i32_0 : i32, i32
  }
  func.func @transform_2(%arg0: i32) -> (i32, i32) {
    %c0_i32 = arith.constant 0 : i32
    %c0_i32_0 = arith.constant 0 : i32
    %c0_i32_1 = arith.constant 0 : i32
    return %c0_i32, %c0_i32_0 : i32, i32
  }
  func.func @transform_3(%arg0: i32) -> (i32, i32) {
    %c0_i32 = arith.constant 0 : i32
    %c0_i32_0 = arith.constant 0 : i32
    %c0_i32_1 = arith.constant 0 : i32
    return %c0_i32, %c0_i32_0 : i32, i32
  }
  func.func @transform_4(%arg0: i32) -> (i32, i32, i32) {
    %c0_i32 = arith.constant 0 : i32
    %c0_i32_0 = arith.constant 0 : i32
    %c0_i32_1 = arith.constant 0 : i32
    %c0_i32_2 = arith.constant 0 : i32
    return %c0_i32, %c0_i32_0, %c0_i32_1 : i32, i32, i32
  }
}

</mosaic_0001>

<bundles_post_ra>
// kernel: basic_block.1
= control target key start
LH: loop header
LB: loop body
LE: loop exit
PB: predicated region body
PF: predicated region fallthrough
CT: control target
= control target key end

     0   :  { %v562_v1 = vmov 1   ;;  %v563_v2 = vmov 7   ;;  %s761_s0 = inlined_call_operand.vmem [shape: f32[2,4,256], index: 0, kind: input, shape index: {}]   ;;  %s762_s1 = inlined_call_operand.vmem [shape: f32[8,12], index: 1, kind: input, shape index: {}]   ;;  %s763_s2 = inlined_call_operand.vmem [shape: f32[8,1], index: 2, kind: input, shape index: {}]   ;;  %s764_s3 = inlined_call_operand.vmem [shape: f32[8,1], index: 3, kind: input, shape index: {}]   ;;  %s765_s4 = inlined_call_operand.hbm [shape: f32[2,8,128], index: 4, kind: output, shape index: {}]  }
   0x1   :  { %v20_v0 = vld [vmem:[%s762_s1] sm:$0xff]  ;;  %523 = vset.pattern.permute.xlu0 %v562_v1  ;;  %525 = vset.pattern.permute.xlu1 %v563_v2 }
   0x2   :  { %87 = vperm.xlu0 %523, %v20_v0   ;;  %214 = vperm.xlu1 %525, %v20_v0  }
   0x3   :  { %9 = vsyncpa [#allocation3], 0  ;;  %v564_v3 = vmov 4   ;;  %v565_v4 = vmov 10   ;;  %v566_v5 = vmov 2   ;;  %v567_v6 = vmov 5  }
   0x4   :  { %v568_v7 = vmov 8   ;;  %v569_v8 = vmov 9   ;;  %v570_v9 = vmov 11   ;;  %v571_v10 = vmov 0   ;;  %v614_v16 = vld [vmem:[%s761_s0 + $0x8] sm:$0xff]  ;;  %v18_v17 = vld [vmem:[%s761_s0] sm:$0xff] }
   0x5   :  { %v572_v11 = vmov 3   ;;  %v573_v12 = vmov 6   ;;  %v26_v13 = vlaneseq  ;;  %s574_s0 = smov 127   ;;  %s575_s20 = smov 126   ;;  %vm144_vm0 = vcmask 1039360  }
   0x6   :  { %524 = vset.pattern.permute.xlu0 %v564_v3  ;;  %526 = vset.pattern.permute.xlu1 %v565_v4  ;;  %vm357_vm1 = vcmask 1031168   ;;  %s576_s25 = smov [#allocation2]  }
   0x7   :  { %152 = vperm.xlu0 %524, %v20_v0   ;;  %276 = vperm.xlu1 %526, %v20_v0   ;;  %v608_v14 = vshrl.u32 %v26_v13, 7  ;;  %s495_s26 = sshll.u32 %s576_s25, 4  ;;  %s496_s26 = int_to_ptr.vmem [resolvable:$true] %s495_s26 }
   0x8   :  { %p543_p1 = scmp.lt.s32.totalorder %s496_s26, %s496_s26 }
   0x9   :  { %v28_v15 = vsub.s32 0, %v608_v14  ;;  %v98_v20 = vsub.s32 4, %v608_v14  ;;  %v44_v21 = vsub.s32 1, %v608_v14  ;;  %v161_v26 = vsub.s32 5, %v608_v14 }
   0xa   :  { %v60_v29 = vsub.s32 2, %v608_v14  ;;  %v223_v43 = vsub.s32 6, %v608_v14  ;;  %v76_v47 = vsub.s32 3, %v608_v14  ;;  %v285_v58 = vsub.s32 7, %v608_v14 }
   0xb   :  { %527 = vset.pattern.permute.xlu1 %v566_v5  ;;  %528 = vset.pattern.permute.xlu0 %v567_v6  ;;  %v620_v18 = vrot.slane %v614_v16, %v28_v15  ;;  %v622_v19 = vrot.slane %v18_v17, %v28_v15  ;;  %v99_v24 = vrot.slane %v18_v17, %v98_v20 }
   0xc   :  { %338 = vperm.xlu1 %527, %v20_v0   ;;  %365 = vperm.xlu0 %528, %v20_v0   ;;  %v632_v25 = vrot.slane %v18_v17, %v44_v21  ;;  %v636_v28 = vrot.slane %v614_v16, %v44_v21  ;;  %v107_v33 = vrot.slane %v614_v16, %v98_v20 }
   0xd   :  { %v627_v22 = vrot.slane %v620_v18, %v28_v15  ;;  %v630_v23 = vrot.slane %v622_v19, %v28_v15  ;;  %v641_v32 = vrot.slane %v99_v24, %v28_v15  ;;  %v162_v35 = vrot.slane %v18_v17, %v161_v26 }
   0xe   :  { %v645_v34 = vrot.slane %v632_v25, %v44_v21  ;;  %v650_v36 = vrot.slane %v636_v28, %v44_v21  ;;  %v652_v37 = vrot.slane %v18_v17, %v60_v29  ;;  %v655_v40 = vrot.slane %v107_v33, %v28_v15 }
   0xf   :  { %v659_v42 = vrot.slane %v162_v35, %v44_v21  ;;  %v666_v46 = vrot.slane %v614_v16, %v60_v29  ;;  %v170_v50 = vrot.slane %v614_v16, %v161_v26  ;;  %v224_v52 = vrot.slane %v18_v17, %v223_v43 }
  0x10   :  { %529 = vset.pattern.permute.xlu1 %v568_v7  ;;  %533 = vset.pattern.permute.xlu0 %v569_v8  ;;  %v240_v45 = vrot.slane %v652_v37, %v60_v29  ;;  %v675_v55 = vrot.slane %v18_v17, %v76_v47  ;;  %v682_v61 = vrot.slane %v614_v16, %v76_v47 }
  0x11   :  { %391 = vperm.xlu1 %529, %v20_v0   ;;  %71 = vperm.xlu0 %533, %v20_v0   ;;  %v248_v54 = vrot.slane %v666_v46, %v60_v29  ;;  %v190_v56 = vrot.slane %v170_v50, %v44_v21  ;;  %v244_v57 = vrot.slane %v224_v52, %v60_v29 }
  0x12   :  { %v302_v60 = vrot.slane %v675_v55, %v76_v47  ;;  %v286_v2 = vrot.slane %v18_v17, %v285_v58  ;;  %v310_v4 = vrot.slane %v682_v61, %v76_v47 }
  0x14   :  { %v306_v6 = vrot.slane %v286_v2, %v76_v47 }
  0x15   :  { %530 = vset.pattern.permute.xlu1 %v570_v9  ;;  %534 = vset.pattern.permute.xlu0 %v571_v10 }
  0x16   :  { %417 = vperm.xlu1 %530, %v20_v0   ;;  %23 = vperm.xlu0 %534, %v20_v0  }
  0x1a   :  { %531 = vset.pattern.permute.xlu1 %v572_v11 }
  0x1b   :  { %39 = vperm.xlu1 %531, %v20_v0  }
  0x1f   :  { %532 = vset.pattern.permute.xlu1 %v573_v12 }
  0x20   :  { %55 = vperm.xlu1 %532, %v20_v0   ;;  %v232_v0 = vrot.slane %v614_v16, %v223_v43 }
  0x22   :  { %v252_v5 = vrot.slane %v232_v0, %v60_v29 }
  0x24   :  { %535 = vset.pattern.permute.xlu1 %v571_v10  ;;  %v294_v10 = vrot.slane %v614_v16, %v285_v58 }
  0x26   :  { %v314_v14 = vrot.slane %v294_v10, %v76_v47 }
  0x81   :  { %v88_v27 = vpop.permute.xlu0 %87  ;;  %v215_v49 = vpop.permute.xlu1 %214 }
  0x82   :  { %v130_v30 = vmul.f32 %v627_v22, %v88_v27  ;;  %v128_v31 = vmul.f32 %v630_v23, %v88_v27  ;;  %v129_v38 = vmul.f32 %v641_v32, %v88_v27  ;;  %v131_v48 = vmul.f32 %v655_v40, %v88_v27 }
  0x83   :  { %v253_v53 = vmul.f32 %v240_v45, %v215_v49  ;;  %v255_v59 = vmul.f32 %v248_v54, %v215_v49  ;;  %v254_v1 = vmul.f32 %v244_v57, %v215_v49  ;;  %v256_v8 = vmul.f32 %v252_v5, %v215_v49 }
  0x84   :  { %140 = vrot.lane.b32.xlu0 %v130_v30, %s574_s0  ;;  %136 = vrot.lane.b32.xlu1 %v128_v31, %s574_s0 }
  0x86   :  { %v153_v39 = vpop.permute.xlu0 %152  ;;  %v277_v63 = vpop.permute.xlu1 %276 }
  0x87   :  { %v191_v41 = vmul.f32 %v645_v34, %v153_v39  ;;  %v193_v44 = vmul.f32 %v650_v36, %v153_v39  ;;  %v192_v51 = vmul.f32 %v659_v42, %v153_v39  ;;  %v194_v62 = vmul.f32 %v190_v56, %v153_v39 }
  0x88   :  { %138 = vrot.lane.b32.xlu1 %v129_v38, %s574_s0  ;;  %v315_v3 = vmul.f32 %v302_v60, %v277_v63  ;;  %v317_v7 = vmul.f32 %v310_v4, %v277_v63  ;;  %v316_v11 = vmul.f32 %v306_v6, %v277_v63  ;;  %v318_v17 = vmul.f32 %v314_v14, %v277_v63 }
  0x89   :  { %199 = vrot.lane.b32.xlu0 %v191_v41, %s574_s0 }
  0x8b   :  { %v339_v9 = vpop.permute.xlu1 %338  ;;  %v366_v20 = vpop.permute.xlu0 %365 }
  0x8c   :  { %142 = vrot.lane.b32.xlu1 %v131_v48, %s574_s0  ;;  %v341_v12 = vmul.f32 %v339_v9, %v630_v23  ;;  %v343_v15 = vmul.f32 %v339_v9, %v627_v22  ;;  %v342_v16 = vmul.f32 %v339_v9, %v641_v32  ;;  %v368_v21 = vmul.f32 %v366_v20, %v645_v34 }
  0x8d   :  { %203 = vrot.lane.b32.xlu0 %v193_v44, %s574_s0  ;;  %v370_v23 = vmul.f32 %v366_v20, %v650_v36  ;;  %v344_v24 = vmul.f32 %v339_v9, %v655_v40  ;;  %v369_v22 = vmul.f32 %v366_v20, %v659_v42  ;;  %v371_v30 = vmul.f32 %v366_v20, %v190_v56 }
  0x90   :  { %201 = vrot.lane.b32.xlu1 %v192_v51, %s574_s0  ;;  %v392_v26 = vpop.permute.xlu1 %391  ;;  %v72_v40 = vpop.permute.xlu0 %71 }
  0x91   :  { %261 = vrot.lane.b32.xlu0 %v253_v53, %s574_s0  ;;  %v394_v27 = vmul.f32 %v392_v26, %v240_v45  ;;  %v396_v29 = vmul.f32 %v392_v26, %v248_v54  ;;  %v395_v32 = vmul.f32 %v392_v26, %v244_v57  ;;  %v397_v35 = vmul.f32 %v392_v26, %v252_v5 }
  0x92   :  { %v82_v10 = vmul.f32 %v675_v55, %v72_v40 }
  0x94   :  { %205 = vrot.lane.b32.xlu1 %v194_v62, %s574_s0 }
  0x95   :  { %265 = vrot.lane.b32.xlu0 %v255_v59, %s574_s0  ;;  %v418_v31 = vpop.permute.xlu1 %417  ;;  %v24_v42 = vpop.permute.xlu0 %23 }
  0x96   :  { %v420_v33 = vmul.f32 %v418_v31, %v302_v60  ;;  %v422_v34 = vmul.f32 %v418_v31, %v310_v4  ;;  %v421_v36 = vmul.f32 %v418_v31, %v306_v6  ;;  %v423_v38 = vmul.f32 %v418_v31, %v314_v14 }
  0x97   :  { %v35_v5 = vmul.f32 %v620_v18, %v24_v42 }
  0x98   :  { %263 = vrot.lane.b32.xlu1 %v254_v1, %s574_s0  ;;  %v34_v1 = vmul.f32 %v622_v19, %v24_v42  ;;  %v443_v42 = vand.u32 127, %v26_v13 }
  0x99   :  { %323 = vrot.lane.b32.xlu0 %v315_v3, %s574_s0 }
  0x9a   :  { %v40_v39 = vpop.permute.xlu1 %39  ;;  %vm444_vm2 = vcmp.lt.s32.totalorder %v443_v42, 16 }
  0x9b   :  { %v50_v0 = vmul.f32 %v632_v25, %v40_v39  ;;  %v51_v4 = vmul.f32 %v636_v28, %v40_v39 }
  0x9c   :  { %267 = vrot.lane.b32.xlu1 %v256_v8, %s574_s0 }
  0x9d   :  { %327 = vrot.lane.b32.xlu0 %v317_v7, %s574_s0  ;;  %v52_v6 = vadd.f32 %v50_v0, %v34_v1 }
  0x9f   :  { %v56_v41 = vpop.permute.xlu1 %55 }
  0xa0   :  { %325 = vrot.lane.b32.xlu1 %v316_v11, %s574_s0  ;;  %v66_v7 = vmul.f32 %v652_v37, %v56_v41  ;;  %v53_v11 = vadd.f32 %v51_v4, %v35_v5 }
  0xa1   :  { %349 = vrot.lane.b32.xlu0 %v341_v12, %s575_s20  ;;  %v67_v12 = vmul.f32 %v666_v46, %v56_v41 }
  0xa2   :  { %v68_v25 = vadd.f32 %v66_v7, %v52_v6 }
  0xa3   :  { %v69_v28 = vadd.f32 %v67_v12, %v53_v11 }
  0xa4   :  { %329 = vrot.lane.b32.xlu1 %v318_v17, %s574_s0  ;;  %v84_v17 = vadd.f32 %v82_v10, %v68_v25  ;;  %v467_v25 = vld [vmem:[%s763_s2] sm:$0xff]  ;;  %s538_s2 = scalar_lea.vmem %s496_s26, 256 }
  0xa5   :  { %353 = vrot.lane.b32.xlu0 %v343_v15, %s575_s20  ;;  %v83_v15 = vmul.f32 %v682_v61, %v72_v40  ;;  %p539_p0 = scmp.ne.s32.totalorder %s496_s26, %s538_s2  ;;  %p544_p2 = scmp.lt.s32.totalorder %s538_s2, %s538_s2 }
  0xa7   :  { %p545_p3 = por %p544_p2, %p543_p1 }
  0xa8   :  { %351 = vrot.lane.b32.xlu1 %v342_v16, %s575_s20 }
  0xa9   :  { %376 = vrot.lane.b32.xlu0 %v368_v21, %s575_s20  ;;  %p546_p4 = pnand %p545_p3, %p539_p0 }
  0xac   :  { %355 = vrot.lane.b32.xlu1 %v344_v24, %s575_s20 }
  0xad   :  { %380 = vrot.lane.b32.xlu0 %v370_v23, %s575_s20  ;;  %v85_v23 = vadd.f32 %v83_v15, %v69_v28  ;;  %v469_v15 = vld [vmem:[%s764_s3] sm:$0xff] }
  0xb0   :  { %378 = vrot.lane.b32.xlu1 %v369_v22, %s575_s20 }
  0xb1   :  { %402 = vrot.lane.b32.xlu0 %v394_v27, %s575_s20 }
  0xb4   :  { %382 = vrot.lane.b32.xlu1 %v371_v30, %s575_s20 }
  0xb5   :  { %406 = vrot.lane.b32.xlu0 %v396_v29, %s575_s20 }
  0xb8   :  { %404 = vrot.lane.b32.xlu1 %v395_v32, %s575_s20 }
  0xb9   :  { %428 = vrot.lane.b32.xlu0 %v420_v33, %s575_s20 }
  0xbc   :  { %408 = vrot.lane.b32.xlu1 %v397_v35, %s575_s20 }
  0xbd   :  { %432 = vrot.lane.b32.xlu0 %v422_v34, %s575_s20 }
  0xc0   :  { %430 = vrot.lane.b32.xlu1 %v421_v36, %s575_s20 }
  0xc4   :  { %434 = vrot.lane.b32.xlu1 %v423_v38, %s575_s20 }
  0xf6   :  { %v137_v43 = vpop.permute.xlu1 %136  ;;  %v141_v44 = vpop.permute.xlu0 %140 }
  0xfa   :  { %v139_v45 = vpop.permute.xlu1 %138 }
  0xfb   :  { %v200_v47 = vpop.permute.xlu0 %199  ;;  %v145_v19 = vsel %vm144_vm0, %v137_v43, %v139_v45 }
  0xfc   :  { %v149_v37 = vadd.f32 %v145_v19, %v84_v17 }
  0xfe   :  { %v143_v48 = vpop.permute.xlu1 %142 }
  0xff   :  { %v204_v49 = vpop.permute.xlu0 %203  ;;  %v146_v21 = vsel %vm144_vm0, %v141_v44, %v143_v48 }
 0x100   :  { %v150_v22 = vadd.f32 %v146_v21, %v85_v23 }
 0x102   :  { %v202_v50 = vpop.permute.xlu1 %201 }
 0x103   :  { %v262_v51 = vpop.permute.xlu0 %261  ;;  %v207_v20 = vsel %vm144_vm0, %v200_v47, %v202_v50 }
 0x104   :  { %v211_v24 = vadd.f32 %v207_v20, %v149_v37 }
 0x106   :  { %v206_v52 = vpop.permute.xlu1 %205 }
 0x107   :  { %v266_v53 = vpop.permute.xlu0 %265  ;;  %v208_v46 = vsel %vm144_vm0, %v204_v49, %v206_v52 }
 0x108   :  { %v212_v32 = vadd.f32 %v208_v46, %v150_v22 }
 0x10a   :  { %v264_v54 = vpop.permute.xlu1 %263 }
 0x10b   :  { %v324_v56 = vpop.permute.xlu0 %323  ;;  %v269_v55 = vsel %vm144_vm0, %v262_v51, %v264_v54 }
 0x10c   :  { %v273_v61 = vadd.f32 %v269_v55, %v211_v24 }
 0x10e   :  { %v268_v57 = vpop.permute.xlu1 %267 }
 0x10f   :  { %v328_v58 = vpop.permute.xlu0 %327  ;;  %v270_v30 = vsel %vm144_vm0, %v266_v53, %v268_v57 }
 0x110   :  { %v274_v36 = vadd.f32 %v270_v30, %v212_v32 }
 0x112   :  { %v326_v59 = vpop.permute.xlu1 %325 }
 0x113   :  { %v350_v60 = vpop.permute.xlu0 %349  ;;  %v331_v26 = vsel %vm144_vm0, %v324_v56, %v326_v59 }
 0x114   :  { %v335_v33 = vadd.f32 %v331_v26, %v273_v61 }
 0x116   :  { %v330_v62 = vpop.permute.xlu1 %329 }
 0x117   :  { %v354_v63 = vpop.permute.xlu0 %353  ;;  %v332_v34 = vsel %vm144_vm0, %v328_v58, %v330_v62 }
 0x118   :  { %v336_v43 = vadd.f32 %v332_v34, %v274_v36 }
 0x11a   :  { %v352_v2 = vpop.permute.xlu1 %351 }
 0x11b   :  { %v377_v3 = vpop.permute.xlu0 %376  ;;  %v358_v31 = vsel %vm357_vm1, %v350_v60, %v352_v2 }
 0x11c   :  { %v362_v38 = vadd.f32 %v358_v31, %v335_v33 }
 0x11e   :  { %v356_v8 = vpop.permute.xlu1 %355 }
 0x11f   :  { %v381_v9 = vpop.permute.xlu0 %380  ;;  %v359_v40 = vsel %vm357_vm1, %v354_v63, %v356_v8 }
 0x120   :  { %v363_v48 = vadd.f32 %v359_v40, %v336_v43 }
 0x122   :  { %v379_v14 = vpop.permute.xlu1 %378 }
 0x123   :  { %v403_v18 = vpop.permute.xlu0 %402  ;;  %v384_v35 = vsel %vm357_vm1, %v377_v3, %v379_v14 }
 0x124   :  { %v388_v44 = vadd.f32 %v384_v35, %v362_v38 }
 0x126   :  { %v383_v16 = vpop.permute.xlu1 %382 }
 0x127   :  { %v407_v27 = vpop.permute.xlu0 %406  ;;  %v385_v47 = vsel %vm357_vm1, %v381_v9, %v383_v16 }
 0x128   :  { %v389_v53 = vadd.f32 %v385_v47, %v363_v48 }
 0x12a   :  { %v405_v29 = vpop.permute.xlu1 %404 }
 0x12b   :  { %v410_v41 = vsel %vm357_vm1, %v403_v18, %v405_v29  ;;  %v429_v45 = vpop.permute.xlu0 %428 }
 0x12c   :  { %v414_v49 = vadd.f32 %v410_v41, %v388_v44 }
 0x12e   :  { %v409_v39 = vpop.permute.xlu1 %408 }
 0x12f   :  { %v411_v51 = vsel %vm357_vm1, %v407_v27, %v409_v39  ;;  %v433_v57 = vpop.permute.xlu0 %432 }
 0x130   :  { %v415_v56 = vadd.f32 %v411_v51, %v389_v53 }
 0x132   :  { %v431_v50 = vpop.permute.xlu1 %430 }
 0x133   :  { %v436_v52 = vsel %vm357_vm1, %v429_v45, %v431_v50 }
 0x134   :  { %v440_v54 = vadd.f32 %v436_v52, %v414_v49 }
 0x136   :  { %v435_v58 = vpop.permute.xlu1 %434  ;;  %v445_v59 = vsel %vm444_vm2, %v440_v54, 0.0 }
 0x137   :  { %v437_v13 = vsel %vm357_vm1, %v433_v57, %v435_v58  ;;  %447 = vadd.xlane.f32.xlu0 %v445_v59  ;;  %v452_v62 = vmul.f32 %v445_v59, %v445_v59 }
 0x138   :  { %v441_v60 = vadd.f32 %v437_v13, %v415_v56 }
 0x13a   :  { %v446_v63 = vsel %vm444_vm2, %v441_v60, 0.0 }
 0x13b   :  { %449 = vadd.xlane.f32.xlu1 %v446_v63  ;;  %454 = vadd.xlane.f32.xlu0 %v452_v62  ;;  %v453_v0 = vmul.f32 %v446_v63, %v446_v63 }
 0x13f   :  { %456 = vadd.xlane.f32.xlu0 %v453_v0 }
 0x1c4   :  { %v448_v1 = vpop.xlane.xlu0 %447 }
 0x1c8   :  { %v450_v2 = vpop.xlane.xlu1 %449  ;;  %v455_v3 = vpop.xlane.xlu0 %454 }
 0x1c9   :  { %v451_v4 = vadd.f32 %v450_v2, %v448_v1 }
 0x1cb   :  { %v460_v5 = vmul.f32 0.03125, %v451_v4 }
 0x1cc   :  { %v457_v6 = vpop.xlane.xlu0 %456 }
 0x1cd   :  { %v458_v7 = vadd.f32 %v457_v6, %v455_v3  ;;  %v462_v8 = vmul.f32 %v460_v5, %v460_v5 }
 0x1cf   :  { %v461_v9 = vmul.f32 0.03125, %v458_v7 }
 0x1d1   :  { %v463_v10 = vsub.f32 %v461_v9, %v462_v8 }
 0x1d3   :  { %v464_v11 = vmax.f32 %v463_v10, 0.0 }
 0x1d5   :  { %v465_v12 = vadd.f32 1e-05, %v464_v11 }
 0x1d7   :  { %536 = vrsqrt.f32 %v465_v12 }
 0x1e1   :  { %v537_v14 = vpop.eup %536 }
 0x1e2   :  { %v468_v19 = vmul.f32 %v537_v14, %v467_v25 }
 0x1e4   :  { %474 = vperm.xlu1 %535, %v468_v19   ;;  %v470_v28 = vmul.f32 %v468_v19, %v460_v5 }
 0x1e6   :  { %v471_v17 = vsub.f32 %v469_v15, %v470_v28 }
 0x1e8   :  { %481 = vperm.xlu0 %534, %v471_v17  }
 0x263   :  { %v475_v18 = vpop.permute.xlu1 %474 }
 0x264   :  { %v477_v20 = vmul.f32 %v475_v18, %v440_v54  ;;  %v478_v37 = vmul.f32 %v475_v18, %v441_v60 }
 0x267   :  { %v482_v16 = vpop.permute.xlu0 %481 }
 0x268   :  { %v484_v21 = vadd.f32 %v482_v16, %v477_v20  ;;  %v485_v55 = vadd.f32 %v482_v16, %v478_v37 }
 0x26a   :  { %v486_v23 = vmax.f32 %v484_v21, 0.0  ;;  %v487_v24 = vmax.f32 %v485_v55, 0.0 }
 0x26c   :  { %488 = vst [vmem:[#allocation2] sm:$0xff] %v486_v23  ;;  %489 = vst [vmem:[#allocation2 + $0x8] sm:$0xff] %v487_v24 }
 0x26d   :  { %549 = shalt.err (!%p546_p4)
}
 0x26e   :  { %s550_s28 = scalar_lea.hbm %s765_s4, 256 }
 0x26f   :  { %p551_p5 = scmp.ne.s32.totalorder %s765_s4, %s550_s28  ;;  %p554_p6 = scmp.lt.u32.totalorder %s550_s28, %s765_s4 }
 0x271   :  { %p556_p7 = pnand %p554_p6, %p551_p5 }
 0x273   :  { %559 = shalt.err (!%p556_p7)
}
 0x274   :  { %s577_s7 = smov 128   ;;  %s578_s8 = smov 8  }
 0x275   :  { %501 = dma.vmem_to_hbm [thread:$0]  %s496_s26, 256, %s765_s4, [#allocation3], %s577_s7, %s577_s7, %s578_s8  }
 0x276   :  { %560 = dma.done.wait [#allocation3], 256  }
 0x277   :  { %561 = vsyncadd [#allocation3], 4294967040 }
 0x278   :  { %505 = vsyncpa [#allocation3], 1 }

</bundles_post_ra>
